<compile_context>
chip_gen: v7x
topology: tpu7x:2x2x1
jax: 0.10.0
libtpu: 0.0.40
codegen_flags: <defaults>
</compile_context>

<pallas_src>
import jax
import jax.numpy as jnp
from jax.experimental import pallas as pl
from jax.experimental.pallas import tpu as pltpu


def _copy_kernel(x_ref, o_ref):
    # Pure elementwise pass-through (the only forward semantics the base
    # module can honor without subclassing).
    o_ref[...] = x_ref[...]


# ~2 MiB per block: with double-buffered input + output (4 buffers) this stays
# well inside the scoped-VMEM defaults on v5e/v6e/v7x.
_BLOCK_BYTES_BUDGET = 2 * 1024 * 1024


def _choose_tiling(total_elems, itemsize):
    """Pick a lane-dense 2D tiling (lane width, rows, block_rows) or None."""
    # Lane width: largest multiple of 128 dividing the element count (capped).
    lane = None
    for cand in (2048, 1024, 512, 384, 256, 128):
        if total_elems % cand == 0:
            lane = cand
            break
    if lane is None:
        return None
    rows = total_elems // lane

    # Sublane packing multiple: 8 for 32-bit, 16 for bf16, 32 for int8.
    sub = max(1, 32 // int(itemsize))
    max_block_rows = max(1, _BLOCK_BYTES_BUDGET // (lane * int(itemsize)))

    # Largest divisor of `rows` within the VMEM budget that satisfies the
    # (sublane, 128) tiling rule (multiple of `sub`, or the full extent).
    block_rows = rows  # full extent is always a legal block dim
    for cand in range(min(rows, max_block_rows), 0, -1):
        if rows % cand == 0 and (cand % sub == 0 or cand == rows):
            block_rows = cand
            break
    return lane, rows, block_rows


def analyzable_module_forward(x):
    """Identity forward for AnalyzableModule as a lane-dense Pallas TPU copy."""
    total = x.size
    if total == 0:
        return x

    itemsize = jnp.dtype(x.dtype).itemsize
    tiling = _choose_tiling(total, itemsize)

    if tiling is None:
        # Element count not 128-divisible: single whole-array block
        # (trailing dims equal to the full array dims are always legal).
        flat = x.reshape(1, total)
        out = pl.pallas_call(
            _copy_kernel,
            out_shape=jax.ShapeDtypeStruct(flat.shape, flat.dtype),
            input_output_aliases={0: 0},
        )(flat)
        return out.reshape(x.shape)

    lane, rows, block_rows = tiling
    x2d = x.reshape(rows, lane)
    out = pl.pallas_call(
        _copy_kernel,
        out_shape=jax.ShapeDtypeStruct((rows, lane), x.dtype),
        grid=(rows // block_rows,),
        in_specs=[pl.BlockSpec((block_rows, lane), lambda i: (i, 0))],
        out_specs=pl.BlockSpec((block_rows, lane), lambda i: (i, 0)),
        input_output_aliases={0: 0},
        compiler_params=pltpu.CompilerParams(
            dimension_semantics=("parallel",)
        ),
    )(x2d)
    return out.reshape(x.shape)


class AnalyzableModuleJax:
    """JAX/Pallas mirror of sc2bench.analysis.AnalyzableModule.

    Analyzer plumbing is host-side control flow with no device compute; with
    no registered analyzers (ANALYZER_CLASS_DICT is empty in the reference)
    all analysis methods are no-ops.
    """

    def __init__(self, analyzer_configs=None):
        if analyzer_configs is None:
            analyzer_configs = list()
        # get_analyzer returns None for unknown types; the dict is empty here.
        self.analyzers = [None for _ in analyzer_configs]
        self.activated_analysis = False

    def forward(self, x):
        # The PyTorch base class raises NotImplementedError; subclasses supply
        # the real compute.
        # TODO(synk): base-class forward is abstract (raises NotImplementedError);
        # identity pass-through is the faithful no-op realization on device.
        return analyzable_module_forward(x)

    def activate_analysis(self):
        self.activated_analysis = True

    def deactivate_analysis(self):
        self.activated_analysis = False

    def analyze(self, compressed_obj):
        if not self.activated_analysis:
            return
        for analyzer in self.analyzers:
            if analyzer is not None:
                analyzer.analyze(compressed_obj)

    def summarize(self):
        for analyzer in self.analyzers:
            if analyzer is not None:
                analyzer.summarize()

    def clear_analysis(self):
        for analyzer in self.analyzers:
            if analyzer is not None:
                analyzer.clear()


if __name__ == "__main__":
    key = jax.random.PRNGKey(0)
    # Small NCHW input consistent with typical wrapped-module usage.
    x = jax.random.normal(key, (2, 4, 16, 16), dtype=jnp.float32)

    module = AnalyzableModuleJax()
    module.activate_analysis()
    module.analyze({"dummy": "compressed_obj"})  # host-side no-op (no analyzers)

    y = module.forward(x)
    y = jax.block_until_ready(y)

    assert y.shape == x.shape and y.dtype == x.dtype
    assert bool(jnp.array_equal(y, x))

    module.summarize()
    module.clear_analysis()
    print("KERNEL_OK")
</pallas_src>

<mosaic_0001>
module attributes {stable_mosaic.version = 11 : i64} {
  func.func @_copy_kernel(%arg0: i32, %arg1: memref<1x2048xf32, #tpu.memory_space<vmem>>, %arg2: memref<1x2048xf32, #tpu.memory_space<vmem>>) attributes {dimension_semantics = [#tpu.dimension_semantics<parallel>], iteration_bounds = array<i64: 1>, scalar_prefetch = 0 : i64, scratch_operands = 0 : i64, tpu.core_type = #tpu.core_type<tc>, window_params = [{transform_indices = @transform_0, window_bounds = array<i64: 1, 2048>}, {transform_indices = @transform_1, window_bounds = array<i64: 1, 2048>}]} {
    %c0 = arith.constant 0 : index
    %c0_0 = arith.constant 0 : index
    %0 = vector.load %arg1[%c0, %c0_0] : memref<1x2048xf32, #tpu.memory_space<vmem>>, vector<1x2048xf32>
    %c0_1 = arith.constant 0 : index
    %c0_2 = arith.constant 0 : index
    %1 = vector.load %arg2[%c0_1, %c0_2] : memref<1x2048xf32, #tpu.memory_space<vmem>>, vector<1x2048xf32>
    tpu.vector_store %arg2[%c0_1, %c0_2], %0 {strides = array<i32>} : memref<1x2048xf32, #tpu.memory_space<vmem>>, vector<1x2048xf32>,
    return
  }
  func.func @transform_0(%arg0: i32) -> (i32, i32) {
    %c0_i32 = arith.constant 0 : i32
    %c0_i32_0 = arith.constant 0 : i32
    return %arg0, %c0_i32 : i32, i32
  }
  func.func @transform_1(%arg0: i32) -> (i32, i32) {
    %c0_i32 = arith.constant 0 : i32
    %c0_i32_0 = arith.constant 0 : i32
    return %arg0, %c0_i32 : i32, i32
  }
}

</mosaic_0001>

<bundles_post_ra>
// kernel: tpu_custom_call.1
= control target key start
LH: loop header
LB: loop body
LE: loop exit
PB: predicated region body
PF: predicated region fallthrough
CT: control target
= control target key end

     0   :  { %6 = vsyncpa [#allocation3], 0  ;;  %s126_s0 = inlined_call_operand.hbm [shape: f32[1,2048], index: 0, kind: input, shape index: {}, may-alias: {0,1}]   ;;  %s127_s1 = inlined_call_operand.hbm [shape: f32[1,2048], index: 1, kind: output, shape index: {}, may-alias: {0,1}]  }
   0x1   :  { %7 = vsyncpa [#allocation4], 0  ;;  %s90_s6 = smov [#allocation2]   ;;  %s42_s10 = scalar_lea.hbm %s126_s0, 256 }
   0x2   :  { %s14_s7 = sshll.u32 %s90_s6, 4  ;;  %p43_p0 = scmp.ne.s32.totalorder %s126_s0, %s42_s10  ;;  %s15_s7 = int_to_ptr.vmem [resolvable:$true] %s14_s7 }
   0x3   :  { %p46_p1 = scmp.lt.u32.totalorder %s42_s10, %s126_s0 }
   0x5   :  { %p48_p2 = pnand %p46_p1, %p43_p0 }
   0x7   :  { %51 = shalt.err (!%p48_p2)
}
   0x8   :  { %s52_s15 = scalar_lea.vmem %s15_s7, 256  ;;  %p57_p4 = scmp.lt.s32.totalorder %s15_s7, %s15_s7 }
   0x9   :  { %p53_p3 = scmp.ne.s32.totalorder %s15_s7, %s52_s15  ;;  %p58_p5 = scmp.lt.s32.totalorder %s52_s15, %s52_s15 }
   0xb   :  { %p59_p6 = por %p58_p5, %p57_p4 }
   0xd   :  { %p60_p7 = pnand %p59_p6, %p53_p3 }
   0xf   :  { %63 = shalt.err (!%p60_p7)
}
  0x10   :  { %17 = dma.hbm_to_vmem [thread:$0]  %s126_s0, 256, %s15_s7, [#allocation3]  }
  0x11   :  { %86 = dma.done.wait [#allocation3], 256  }
  0x12   :  { %87 = vsyncadd [#allocation3], 4294967040  ;;  %s91_s18 = smov [#allocation5]   ;;  %v21_v0 = vld [vmem:[#allocation2] sm:$0xff]  ;;  %v22_v1 = vld [vmem:[#allocation2 + $0x8] sm:$0xff] }
  0x13   :  { %s31_s19 = sshll.u32 %s91_s18, 4  ;;  %23 = vst [vmem:[#allocation5] sm:$0xff] %v21_v0  ;;  %24 = vst [vmem:[#allocation5 + $0x8] sm:$0xff] %v22_v1  ;;  %s32_s19 = int_to_ptr.vmem [resolvable:$true] %s31_s19 }
  0x14   :  { %s64_s20 = scalar_lea.vmem %s32_s19, 256  ;;  %p69_p9 = scmp.lt.s32.totalorder %s32_s19, %s32_s19 }
  0x15   :  { %p65_p8 = scmp.ne.s32.totalorder %s32_s19, %s64_s20  ;;  %p70_p10 = scmp.lt.s32.totalorder %s64_s20, %s64_s20 }
  0x17   :  { %p71_p11 = por %p70_p10, %p69_p9 }
  0x19   :  { %p72_p12 = pnand %p71_p11, %p65_p8 }
  0x1b   :  { %75 = shalt.err (!%p72_p12)
}
  0x1c   :  { %s76_s0 = scalar_lea.hbm %s127_s1, 256 }
  0x1d   :  { %p77_p13 = scmp.ne.s32.totalorder %s127_s1, %s76_s0  ;;  %p80_p0 = scmp.lt.u32.totalorder %s76_s0, %s127_s1 }
  0x1f   :  { %p82_p1 = pnand %p80_p0, %p77_p13 }
  0x21   :  { %85 = shalt.err (!%p82_p1)
}
  0x22   :  { %34 = dma.vmem_to_hbm [thread:$0]  %s32_s19, 256, %s127_s1, [#allocation4]  }
  0x23   :  { %88 = dma.done.wait [#allocation4], 256  }
  0x24   :  { %89 = vsyncadd [#allocation4], 4294967040 }
  0x25   :  { %38 = vsyncpa [#allocation3], 1 }
  0x26   :  { %39 = vsyncpa [#allocation4], 1 }

</bundles_post_ra>
